<compile_context>
chip_gen: v6e
topology: v6e:2x2x1
jax: 0.10.0
libtpu: 0.0.40
codegen_flags: <defaults>
</compile_context>

<pallas_src>
import math
import functools

import jax
import jax.numpy as jnp
from jax import lax
from jax.experimental import pallas as pl
from jax.experimental.pallas import tpu as pltpu


# ---------------------------------------------------------------------------
# Generation-aware VMEM budget
# ---------------------------------------------------------------------------
def _vmem_budget():
    """Returns (tile budget bytes, vmem_limit_bytes cap) for the local TPU."""
    cap = None
    try:
        cap = getattr(pltpu.get_tpu_info(), "vmem_capacity_bytes", None)
    except Exception:
        cap = None
    if cap is None or cap <= (64 << 20):
        # v7x (64 MiB per TC) or unknown: stay well clear of the physical limit
        # so Mosaic internal scratch / semaphores still fit.
        return 40 << 20, 56 << 20
    # v5e / v6e: 128 MiB VMEM — use it; bigger tiles amortize the ~0.35 us/step
    # overhead and K/V re-fetches.
    return 96 << 20, 104 << 20


# ---------------------------------------------------------------------------
# Kernels
# ---------------------------------------------------------------------------
def _sdpa_attn_kernel(q_ref, k_ref, v_ref, o_ref, attn_ref, *, scale):
    """Resident-K/V step: (Hc, TQ, D) queries vs the full (Hc, Lk, D) K/V block.

    Emits both the output tile and the attention-probability tile.  Exact f32
    division is used so the emitted attention rows sum to 1 (matching torch's
    softmax), at the cost of the extra VALU work only on this path.
    """
    q = q_ref[0] * scale              # fold 1/sqrt(D) into the small (Hc,TQ,D) tile
    k = k_ref[0]                      # (Hc, Lk, D)
    v = v_ref[0]                      # (Hc, Lk, D)

    # scores = q_scaled @ k^T: contraction over D expressed directly so the MXU
    # consumes K row-major (no XLU transpose / VMEM copy of the K tile).
    scores = lax.dot_general(
        q, k,
        dimension_numbers=(((2,), (2,)), ((0,), (0,))),
        preferred_element_type=jnp.float32,
    )                                 # (Hc, TQ, Lk) f32

    m = jnp.max(scores, axis=-1, keepdims=True)
    e = jnp.exp(scores - m)
    denom = jnp.sum(e, axis=-1, keepdims=True)
    attn = e / denom                  # exact division: rows sum to 1

    out = lax.dot_general(
        attn.astype(v.dtype), v,
        dimension_numbers=(((2,), (1,)), ((0,), (0,))),
        preferred_element_type=jnp.float32,
    )                                 # (Hc, TQ, D) f32

    o_ref[0] = out.astype(o_ref.dtype)
    attn_ref[0] = attn.astype(attn_ref.dtype)


def _sdpa_flash_kernel(q_ref, k_ref, v_ref, o_ref, m_sc, l_sc, acc_sc, *, scale):
    """Flash-style step: online softmax over K tiles, no attention writeback."""
    kb = pl.program_id(3)

    @pl.when(kb == 0)
    def _():
        m_sc[...] = jnp.full(m_sc.shape, -jnp.inf, dtype=m_sc.dtype)
        l_sc[...] = jnp.zeros(l_sc.shape, dtype=l_sc.dtype)
        acc_sc[...] = jnp.zeros(acc_sc.shape, dtype=acc_sc.dtype)

    q = q_ref[0] * scale              # (Hc, TQ, D), scale folded into q
    k = k_ref[0]                      # (Hc, TK, D)
    v = v_ref[0]                      # (Hc, TK, D)

    s = lax.dot_general(
        q, k,
        dimension_numbers=(((2,), (2,)), ((0,), (0,))),
        preferred_element_type=jnp.float32,
    )                                 # (Hc, TQ, TK) f32

    m_prev = m_sc[...]
    m_new = jnp.maximum(m_prev, jnp.max(s, axis=-1, keepdims=True))
    alpha = jnp.exp(m_prev - m_new)   # rescale factor for previous partials
    p = jnp.exp(s - m_new)            # unnormalized probabilities

    l_sc[...] = alpha * l_sc[...] + jnp.sum(p, axis=-1, keepdims=True)
    acc_sc[...] = alpha * acc_sc[...] + lax.dot_general(
        p.astype(v.dtype), v,
        dimension_numbers=(((2,), (1,)), ((0,), (0,))),
        preferred_element_type=jnp.float32,
    )
    m_sc[...] = m_new

    @pl.when(kb == pl.num_programs(3) - 1)
    def _():
        # Deferred normalization: Hc*TQ*D multiplies instead of Hc*TQ*Lk, and
        # the reciprocal runs on the EUP slot (essentially free).
        inv = pl.reciprocal(l_sc[...], approx=True)
        o_ref[0] = (acc_sc[...] * inv).astype(o_ref.dtype)


# ---------------------------------------------------------------------------
# Tile selection
# ---------------------------------------------------------------------------
def _tq_candidates(Lq, elt_bytes):
    # bf16 packs two rows per sublane -> require TQ % 16; f32 only needs % 8.
    min_tq = 16 if elt_bytes < 4 else 8
    cands = {t for t in (1024, 512, 256, 128, 64, 32, 16, 8)
             if min_tq <= t <= Lq and Lq % t == 0}
    cands.add(Lq)                     # full extent is always layout-legal
    return sorted(cands, reverse=True)


def _hc_candidates(H):
    return sorted((d for d in range(1, H + 1) if H % d == 0), reverse=True)


def _pick_tiles_resident(H, Lq, Lk, D, elt, attn_elt, budget):
    """(Hc, TQ) for the resident-K/V + attn-output path. Prefers larger TQ."""
    def est(hc, tq):
        blocks = hc * (2 * tq * D * elt       # q + out blocks
                       + 2 * Lk * D * elt     # k + v blocks (resident)
                       + tq * Lk * attn_elt)  # attn block
        return 2 * blocks + 3 * hc * tq * Lk * 4   # double-buffer + f32 temps

    for tq in _tq_candidates(Lq, elt):
        for hc in _hc_candidates(H):
            e_ = est(hc, tq)
            if e_ <= budget:
                return hc, tq, e_
    raise ValueError(
        "ScaledDotProductAttention: resident K/V tiling does not fit VMEM for "
        f"Lk={Lk}, D={D}; call with return_attn=False to use the K-tiled flash path.")


def _pick_tiles_flash(H, Lq, Lk, D, elt, budget):
    """(Hc, TQ, TK) for the flash path. Prefers larger TQ, then larger TK."""
    tk_cands = sorted({t for t in (2048, 1024, 512, 256, 128)
                       if t <= Lk and Lk % t == 0} | {Lk}, reverse=True)

    def est(hc, tq, tk):
        return (2 * hc * (2 * tq * D + 2 * tk * D) * elt   # dbl-buffered q/o + k/v
                + hc * tq * (D + 2) * 4                    # m/l/acc scratch
                + 3 * hc * tq * tk * 4)                    # f32 s/p temporaries

    for tq in _tq_candidates(Lq, elt):
        for tk in tk_cands:
            for hc in _hc_candidates(H):
                e_ = est(hc, tq, tk)
                if e_ <= budget:
                    return hc, tq, tk, e_
    raise ValueError(
        "ScaledDotProductAttention: no flash tiling fits VMEM for "
        f"Lq={Lq}, Lk={Lk}, D={D}.")


# ---------------------------------------------------------------------------
# Wrapper
# ---------------------------------------------------------------------------
@functools.partial(jax.jit, static_argnames=("return_attn",))
def scaled_dot_product_attention(q, k, v, mask=None, return_attn=True):
    """q: (B, H, Lq, D); k, v: (B, H, Lk, D).

    return_attn=True  -> (output, attn)  (module semantics; attn in q.dtype —
                          slightly lossier than torch's float attn for bf16).
    return_attn=False -> (output, None)  fast path: flash kernel, no attn HBM
                          writeback (2-4x less HBM traffic for realistic Lk).
    """
    if mask is not None:
        # TODO(synk): masked_fill(mask == 0, -1e9) branch not implemented.
        raise NotImplementedError("mask is not supported by this Pallas kernel")

    B, H, Lq, D = q.shape
    Lk = k.shape[2]
    elt = q.dtype.itemsize
    scale = 1.0 / math.sqrt(D)
    budget, limit_cap = _vmem_budget()

    flops = 4 * B * H * Lq * Lk * D                    # two matmuls
    transcendentals = B * H * Lq * Lk

    if return_attn:
        attn_dtype = q.dtype
        Hc, TQ, vmem_est = _pick_tiles_resident(
            H, Lq, Lk, D, elt, attn_dtype.itemsize, budget)
        grid = (B, H // Hc, Lq // TQ)   # q axis innermost -> K/V stay resident

        q_spec = pl.BlockSpec((1, Hc, TQ, D), lambda b, hb, qb: (b, hb, qb, 0))
        kv_spec = pl.BlockSpec((1, Hc, Lk, D), lambda b, hb, qb: (b, hb, 0, 0))
        o_spec = pl.BlockSpec((1, Hc, TQ, D), lambda b, hb, qb: (b, hb, qb, 0))
        attn_spec = pl.BlockSpec((1, Hc, TQ, Lk), lambda b, hb, qb: (b, hb, qb, 0))

        # If there is only one (batch, head-block) iteration, shard the query
        # axis across TensorCores instead of leaving a core idle; the cost of
        # re-DMAing K/V per core is far cheaper than losing half the MXU.
        q_sem = "parallel" if B * (H // Hc) < 2 else "arbitrary"

        bytes_accessed = (q.size + k.size + v.size + q.size) * elt \
            + B * H * Lq * Lk * attn_dtype.itemsize
        cost = pl.CostEstimate(flops=flops, transcendentals=transcendentals,
                               bytes_accessed=bytes_accessed)

        out, attn = pl.pallas_call(
            functools.partial(_sdpa_attn_kernel, scale=scale),
            out_shape=(jax.ShapeDtypeStruct((B, H, Lq, D), q.dtype),
                       jax.ShapeDtypeStruct((B, H, Lq, Lk), attn_dtype)),
            grid_spec=pltpu.PrefetchScalarGridSpec(
                num_scalar_prefetch=0,
                grid=grid,
                in_specs=[q_spec, kv_spec, kv_spec],
                out_specs=(o_spec, attn_spec),
            ),
            compiler_params=pltpu.CompilerParams(
                dimension_semantics=("parallel", "parallel", q_sem),
                vmem_limit_bytes=int(min(limit_cap,
                                         max(32 << 20, vmem_est + (4 << 20)))),
            ),
            cost_estimate=cost,
        )(q, k, v)
        return out, attn

    # -------- return_attn=False: flash-style, K tiled, no attn writeback -----
    Hc, TQ, TK, vmem_est = _pick_tiles_flash(H, Lq, Lk, D, elt, budget)
    grid = (B, H // Hc, Lq // TQ, Lk // TK)   # K-tile axis innermost (reduction)

    q_spec = pl.BlockSpec((1, Hc, TQ, D), lambda b, hb, qb, kb: (b, hb, qb, 0))
    k_spec = pl.BlockSpec((1, Hc, TK, D), lambda b, hb, qb, kb: (b, hb, kb, 0))
    o_spec = pl.BlockSpec((1, Hc, TQ, D), lambda b, hb, qb, kb: (b, hb, qb, 0))

    bytes_accessed = (q.size + k.size + v.size + q.size) * elt
    cost = pl.CostEstimate(flops=flops, transcendentals=transcendentals,
                           bytes_accessed=bytes_accessed)

    out = pl.pallas_call(
        functools.partial(_sdpa_flash_kernel, scale=scale),
        out_shape=jax.ShapeDtypeStruct((B, H, Lq, D), q.dtype),
        grid_spec=pltpu.PrefetchScalarGridSpec(
            num_scalar_prefetch=0,
            grid=grid,
            in_specs=[q_spec, k_spec, k_spec],
            out_specs=o_spec,
            scratch_shapes=[pltpu.VMEM((Hc, TQ, 1), jnp.float32),   # running max
                            pltpu.VMEM((Hc, TQ, 1), jnp.float32),   # running denom
                            pltpu.VMEM((Hc, TQ, D), jnp.float32)],  # running acc
        ),
        compiler_params=pltpu.CompilerParams(
            dimension_semantics=("parallel", "parallel", "parallel", "arbitrary"),
            vmem_limit_bytes=int(min(limit_cap,
                                     max(32 << 20, vmem_est + (4 << 20)))),
        ),
        cost_estimate=cost,
    )(q, k, v)
    return out, None


# ---------------------------------------------------------------------------
# Reference & self-test
# ---------------------------------------------------------------------------
def _reference(q, k, v):
    d_emb = q.shape[-1]
    scores = jnp.einsum("bhqd,bhkd->bhqk", q / math.sqrt(d_emb), k)
    attn = jax.nn.softmax(scores, axis=-1)
    out = jnp.einsum("bhqk,bhkd->bhqd", attn, v)
    return out, attn


if __name__ == "__main__":
    key = jax.random.PRNGKey(0)
    kq, kk, kv = jax.random.split(key, 3)

    B, H, Lq, Lk, D = 2, 2, 8, 8, 32
    q = jax.random.normal(kq, (B, H, Lq, D), dtype=jnp.float32)
    k = jax.random.normal(kk, (B, H, Lk, D), dtype=jnp.float32)
    v = jax.random.normal(kv, (B, H, Lk, D), dtype=jnp.float32)

    ref_out, ref_attn = _reference(q, k, v)

    # Full module semantics: (output, attn); exact softmax division for attn.
    out, attn = scaled_dot_product_attention(q, k, v, return_attn=True)
    jax.block_until_ready((out, attn))
    assert jnp.allclose(out, ref_out, atol=1e-4, rtol=1e-4), "output mismatch"
    assert jnp.allclose(attn, ref_attn, atol=1e-4, rtol=1e-4), "attn mismatch"

    # Fast path: flash-style kernel, no attention-weights HBM writeback.
    out_fast, attn_none = scaled_dot_product_attention(q, k, v, return_attn=False)
    jax.block_until_ready(out_fast)
    assert attn_none is None
    # deferred normalization uses the EUP approx reciprocal -> relaxed tolerance
    assert jnp.allclose(out_fast, ref_out, atol=2e-3, rtol=2e-3), "fast-path output mismatch"

    print("KERNEL_OK")
</pallas_src>

<mosaic_0001>
module attributes {stable_mosaic.version = 11 : i64} {
  func.func @_sdpa_attn_kernel(%arg0: i32, %arg1: i32, %arg2: i32, %arg3: memref<1x2x8x32xf32, #tpu.memory_space<vmem>>, %arg4: memref<1x2x8x32xf32, #tpu.memory_space<vmem>>, %arg5: memref<1x2x8x32xf32, #tpu.memory_space<vmem>>, %arg6: memref<1x2x8x32xf32, #tpu.memory_space<vmem>>, %arg7: memref<1x2x8x8xf32, #tpu.memory_space<vmem>>) attributes {dimension_semantics = [#tpu.dimension_semantics<parallel>, #tpu.dimension_semantics<parallel>, #tpu.dimension_semantics<arbitrary>], iteration_bounds = array<i64: 2, 1, 1>, scalar_prefetch = 0 : i64, scratch_operands = 0 : i64, tpu.core_type = #tpu.core_type<tc>, window_params = [{transform_indices = @transform_0, window_bounds = array<i64: 1, 2, 8, 32>}, {transform_indices = @transform_1, window_bounds = array<i64: 1, 2, 8, 32>}, {transform_indices = @transform_2, window_bounds = array<i64: 1, 2, 8, 32>}, {transform_indices = @transform_3, window_bounds = array<i64: 1, 2, 8, 32>}, {transform_indices = @transform_4, window_bounds = array<i64: 1, 2, 8, 8>}]} {
    %c0 = arith.constant 0 : index
    %c0_0 = arith.constant 0 : index
    %c0_1 = arith.constant 0 : index
    %c0_2 = arith.constant 0 : index
    %0 = vector.load %arg3[%c0, %c0_0, %c0_1, %c0_2] : memref<1x2x8x32xf32, #tpu.memory_space<vmem>>, vector<1x2x8x32xf32>
    %1 = vector.shape_cast %0 : vector<1x2x8x32xf32> to vector<2x8x32xf32>
    %cst = arith.constant 0.176776692 : f32
    %2 = vector.broadcast %cst : f32 to vector<2x8x32xf32>
    %3 = arith.mulf %1, %2 : vector<2x8x32xf32>
    %c0_3 = arith.constant 0 : index
    %c0_4 = arith.constant 0 : index
    %c0_5 = arith.constant 0 : index
    %c0_6 = arith.constant 0 : index
    %4 = vector.load %arg4[%c0_3, %c0_4, %c0_5, %c0_6] : memref<1x2x8x32xf32, #tpu.memory_space<vmem>>, vector<1x2x8x32xf32>
    %5 = vector.shape_cast %4 : vector<1x2x8x32xf32> to vector<2x8x32xf32>
    %c0_7 = arith.constant 0 : index
    %c0_8 = arith.constant 0 : index
    %c0_9 = arith.constant 0 : index
    %c0_10 = arith.constant 0 : index
    %6 = vector.load %arg5[%c0_7, %c0_8, %c0_9, %c0_10] : memref<1x2x8x32xf32, #tpu.memory_space<vmem>>, vector<1x2x8x32xf32>
    %7 = vector.shape_cast %6 : vector<1x2x8x32xf32> to vector<2x8x32xf32>
    %cst_11 = arith.constant dense<0.000000e+00> : vector<2x8x8xf32>
    %8 = tpu.matmul %3, %5, %cst_11 {dimension_numbers = #tpu.dot_dimension_numbers<[2], [2], [1], [1], [0, 0, 0, 1, 1, 1], [0], [0]>} : vector<2x8x32xf32>, vector<2x8x32xf32>, vector<2x8x8xf32> -> vector<2x8x8xf32>
    %cst_12 = arith.constant dense<0xFF800000> : vector<2x8xf32>
    %9 = vector.multi_reduction <maximumf>, %8, %cst_12 [2] : vector<2x8x8xf32> to vector<2x8xf32>
    %10 = vector.shape_cast %9 : vector<2x8xf32> to vector<2x8x1xf32>
    %11 = vector.broadcast %10 : vector<2x8x1xf32> to vector<2x8x8xf32>
    %12 = arith.subf %8, %11 : vector<2x8x8xf32>
    %13 = math.exp %12 : vector<2x8x8xf32>
    %cst_13 = arith.constant dense<0.000000e+00> : vector<2x8xf32>
    %14 = vector.multi_reduction <add>, %13, %cst_13 [2] : vector<2x8x8xf32> to vector<2x8xf32>
    %15 = vector.shape_cast %14 : vector<2x8xf32> to vector<2x8x1xf32>
    %16 = vector.broadcast %15 : vector<2x8x1xf32> to vector<2x8x8xf32>
    %17 = arith.divf %13, %16 : vector<2x8x8xf32>
    %cst_14 = arith.constant dense<0.000000e+00> : vector<2x8x32xf32>
    %18 = tpu.matmul %17, %7, %cst_14 {dimension_numbers = #tpu.dot_dimension_numbers<[2], [1], [1], [2], [0, 0, 0, 1, 1, 2], [0], [0]>} : vector<2x8x8xf32>, vector<2x8x32xf32>, vector<2x8x32xf32> -> vector<2x8x32xf32>
    %c0_15 = arith.constant 0 : index
    %c0_16 = arith.constant 0 : index
    %c0_17 = arith.constant 0 : index
    %c0_18 = arith.constant 0 : index
    %19 = vector.load %arg6[%c0_15, %c0_16, %c0_17, %c0_18] : memref<1x2x8x32xf32, #tpu.memory_space<vmem>>, vector<1x2x8x32xf32>
    %20 = vector.shape_cast %19 : vector<1x2x8x32xf32> to vector<2x8x32xf32>
    %21 = vector.shape_cast %18 : vector<2x8x32xf32> to vector<1x2x8x32xf32>
    tpu.vector_store %arg6[%c0_15, %c0_16, %c0_17, %c0_18], %21 {strides = array<i32>} : memref<1x2x8x32xf32, #tpu.memory_space<vmem>>, vector<1x2x8x32xf32>,
    %c0_19 = arith.constant 0 : index
    %c0_20 = arith.constant 0 : index
    %c0_21 = arith.constant 0 : index
    %c0_22 = arith.constant 0 : index
    %22 = vector.load %arg7[%c0_19, %c0_20, %c0_21, %c0_22] : memref<1x2x8x8xf32, #tpu.memory_space<vmem>>, vector<1x2x8x8xf32>
    %23 = vector.shape_cast %22 : vector<1x2x8x8xf32> to vector<2x8x8xf32>
    %24 = vector.shape_cast %17 : vector<2x8x8xf32> to vector<1x2x8x8xf32>
    tpu.vector_store %arg7[%c0_19, %c0_20, %c0_21, %c0_22], %24 {strides = array<i32>} : memref<1x2x8x8xf32, #tpu.memory_space<vmem>>, vector<1x2x8x8xf32>,
    return
  }
  func.func @transform_0(%arg0: i32, %arg1: i32, %arg2: i32) -> (i32, i32, i32, i32) {
    %c0_i32 = arith.constant 0 : i32
    %c0_i32_0 = arith.constant 0 : i32
    return %arg0, %arg1, %arg2, %c0_i32 : i32, i32, i32, i32
  }
  func.func @transform_1(%arg0: i32, %arg1: i32, %arg2: i32) -> (i32, i32, i32, i32) {
    %c0_i32 = arith.constant 0 : i32
    %c0_i32_0 = arith.constant 0 : i32
    %c0_i32_1 = arith.constant 0 : i32
    return %arg0, %arg1, %c0_i32, %c0_i32_0 : i32, i32, i32, i32
  }
  func.func @transform_2(%arg0: i32, %arg1: i32, %arg2: i32) -> (i32, i32, i32, i32) {
    %c0_i32 = arith.constant 0 : i32
    %c0_i32_0 = arith.constant 0 : i32
    %c0_i32_1 = arith.constant 0 : i32
    return %arg0, %arg1, %c0_i32, %c0_i32_0 : i32, i32, i32, i32
  }
  func.func @transform_3(%arg0: i32, %arg1: i32, %arg2: i32) -> (i32, i32, i32, i32) {
    %c0_i32 = arith.constant 0 : i32
    %c0_i32_0 = arith.constant 0 : i32
    return %arg0, %arg1, %arg2, %c0_i32 : i32, i32, i32, i32
  }
  func.func @transform_4(%arg0: i32, %arg1: i32, %arg2: i32) -> (i32, i32, i32, i32) {
    %c0_i32 = arith.constant 0 : i32
    %c0_i32_0 = arith.constant 0 : i32
    return %arg0, %arg1, %arg2, %c0_i32 : i32, i32, i32, i32
  }
}

</mosaic_0001>

<bundles_post_ra>
// kernel: scaled_dot_product_attention.1
= control target key start
LH: loop header
LB: loop body
LE: loop exit
PB: predicated region body
PF: predicated region fallthrough
CT: control target
= control target key end

     0   :  { %s1574_s0 = inlined_call_operand.hbm [shape: f32[2,2,8,32], index: 0, kind: input, shape index: {}]   ;;  %s1575_s1 = inlined_call_operand.hbm [shape: f32[2,2,8,32], index: 1, kind: input, shape index: {}]   ;;  %s1576_s2 = inlined_call_operand.hbm [shape: f32[2,2,8,32], index: 2, kind: input, shape index: {}]   ;;  %s1577_s3 = inlined_call_operand.hbm [shape: f32[2,2,8,32], index: 3, kind: output, shape index: {0}]   ;;  %s1578_s4 = inlined_call_operand.hbm [shape: f32[2,2,8,8], index: 4, kind: output, shape index: {1}]  }
   0x1   :  { %1585 = sst [smem:[#allocation19_spill]] %s1575_s1 }
   0x2   :  { %10 = vsyncpa [#allocation3], 0 }
   0x3   :  { %12 = vsyncpa [#allocation3 + $0x1], 0 }
   0x4   :  { %13 = vsyncpa [#allocation6], 0 }
   0x5   :  { %15 = vsyncpa [#allocation6 + $0x1], 0 }
   0x6   :  { %16 = vsyncpa [#allocation4], 0 }
   0x7   :  { %18 = vsyncpa [#allocation4 + $0x1], 0 }
   0x8   :  { %19 = vsyncpa [#allocation10], 0 }
   0x9   :  { %21 = vsyncpa [#allocation10 + $0x1], 0  ;;  %s1296_s15 = smov 0   ;;  %s1298_s16 = smov 0  }
   0xa   :  { %s1300_s17 = smov 0   ;;  %s1302_s18 = smov 0  }
   0xb   :  { %s1304_s19 = smov 0   ;;  %s1306_s20 = smov 0  }
   0xc LB: > { %1586 = sst [smem:[#allocation15_spill]] %s1254_s19  ;;  %s1327_s21 = sadd.s32 4294967295, %s1258_s20   ;;  %s1258_s20 = sphi %s1306_s20, %s27_s20   ;;  %s1254_s19 = sphi %s1304_s19, %s1603_s19   ;;  %s1250_s18 = sphi %s1302_s18, %s1602_s18   ;;  %s1246_s17 = sphi %s1300_s17, %s1606_s17   ;;  %s1242_s16 = sphi %s1298_s16, %s1605_s16   ;;  %s1238_s15 = sphi %s1296_s15, %s1604_s15  }
   0xd   : > { %s904_s22 = sadd.s32 4294967294, %s1258_s20   ;;  %s46_s23 = sadd.s32 1, %s1254_s19 }
   0xe   : > { %s57_s24 = sadd.s32 1, %s1246_s17  ;;  %p48_p0 = scmp.ge.s32.totalorder %s46_s23, 2 }
   0xf   : > { %p64_p1 = scmp.ne.s32.totalorder %s1246_s17, %s1242_s16  ;;  %p65_p2 = scmp.eq.s32.totalorder %s1258_s20, 0 }
  0x10   : > { %p70_p3 = scmp.ne.s32.totalorder %s1242_s16, %s1238_s15  ;;  %s1608_s23 = smov (%p48_p0, %s46_s23), 0 }
  0x11   : > { %1587 = sst [smem:[#allocation16_spill]] %s1608_s23  ;;  %p1339_p4 = por %p65_p2, %p64_p1 }
  0x12   : > { %p71_p5 = scmp.eq.s32.totalorder %s1327_s21, 0  ;;  %s50_s26 = ssub.s32 %s1254_s19, %s1608_s23 }
  0x13   : > { %p154_p6 = scmp.eq.s32.totalorder %s1327_s21, 1  ;;  %p55_p7 = scmp.eq.s32.totalorder %s50_s26, 0 }
  0x14   : > { %p1347_p8 = por %p71_p5, %p70_p3  ;;  %p160_p10 = scmp.eq.s32.totalorder %s904_s22, 1 }
  0x15   : > { %p1351_p9 = por %p154_p6, %p64_p1  ;;  %p996_p13 = scmp.lt.s32.totalorder %s1258_s20, 2 }
  0x16   : > { %s1356_s29 = scalar_select %p55_p7, %s1246_s17, %s57_s24  }
  0x17   : > { %p1358_p11 = por %p160_p10, %p70_p3  ;;  %s1579_s5 = sand.u32 1, %s1246_s17  }
  0x18   : > { %1591 = sst [smem:[#allocation17_spill]] %s1356_s29  ;;  %s1367_s6 = sshll.u32 %s1579_s5, 4 }
  0x19   : > { %s1592_s30 = scalar_select %p1358_p11, 1, 0 }
  0x1a   : > { %s1370_s7 = sshll.u32 %s1254_s19, 8  ;;  %p1374_p0 = pnand %p996_p13, %p1339_p4 }
  0x1b   : > { %1593 = sst [smem:[#allocation18_spill]] %s1592_s30  ;;  %s234_s9 = sand.u32 1, %s1258_s20  }
  0x1c   : > { %s1595_s1 = sld [smem:[#allocation19_spill]]  ;;  %s238_s13 = scalar_lea.vmem [#allocation5], %s1367_s6 }
  0x1d   : > { %s247_s14 = sshll.u32 %s238_s13, 4  ;;  %p916_p1 = scmp.ge.s32.totalorder %s1258_s20, 1  ;;  %s248_s14 = int_to_ptr.vmem [resolvable:$true] %s247_s14 }
  0x1e   : > { %p278_p2 = scmp.lt.s32.totalorder %s1258_s20, 3  ;;  %s1386_s22 = scalar_lea.sflag [#allocation6], %s234_s9 }
  0x1f   : > { %p1062_p3 = pneg %p1374_p0  ;;  %s1073_s24 = scalar_lea.vmem %s248_s14, 256 }
  0x20   : > { %p1074_p4 = scmp.ne.s32.totalorder %s248_s14, %s1073_s24  ;;  %s1260_s25 = smov [#allocation5]  }
  0x21   : > { %s1078_s26 = sshll.u32 %s1260_s25, 4  ;;  %s1079_s26 = int_to_ptr.vmem [resolvable:$false] %s1078_s26 }
  0x22   : > { %s246_s12 = scalar_lea.hbm %s1595_s1, %s1370_s7  ;;  %p1076_p5 = pnand %p1074_p4, %p1062_p3 }
  0x23   : > { %s1080_s10 = scalar_lea.vmem %s1079_s26, 512  ;;  %p1081_p7 = scmp.lt.s32.totalorder %s248_s14, %s1079_s26 }
  0x24   : > { %p1077_p6 = pneg %p1076_p5  ;;  %p1082_p10 = scmp.lt.s32.totalorder %s1080_s10, %s1073_s24 }
  0x26   : > { %p1083_p13 = por %p1082_p10, %p1081_p7 }
  0x28   : > { %p1084_p12 = pnand %p1083_p13, %p1077_p6 }
  0x2a   : > { %1087 = shalt.err (!%p1084_p12)
}
  0x2b   : > { %s1583_s11 = smov 128   ;;  %s1262_s9 = smov 8  }
  0x2c   : > { %985 = dma.hbm_to_vmem [thread:$0]  (!%p1374_p0), %s246_s12, 256, %s248_s14, %s1386_s22, %s1583_s11, %s1583_s11, %s1262_s9  }
  0x2d   : > { %p1403_p4 = pnand %p916_p1, %p278_p2  ;;  %s223_s26 = scalar_lea.hbm %s1574_s0, %s1370_s7 }
  0x2e   : > { %s214_s10 = scalar_lea.vmem [#allocation2], %s1367_s6  ;;  %s269_s19 = scalar_lea.hbm %s1576_s2, %s1370_s7 }
  0x2f   : > { %s224_s5 = sshll.u32 %s214_s10, 4  ;;  %s1597_s29 = sand.u32 1, %s1246_s17   ;;  %s225_s5 = int_to_ptr.vmem [resolvable:$true] %s224_s5 }
  0x30   : > { %s211_s30 = scalar_lea.sflag [#allocation3], %s1597_s29  ;;  %s1101_s12 = scalar_lea.vmem %s225_s5, 256 }
  0x31   : > { %p1102_p12 = scmp.ne.s32.totalorder %s225_s5, %s1101_s12  ;;  %s1263_s14 = smov [#allocation2]  }
  0x32   : > { %s1106_s11 = sshll.u32 %s1263_s14, 4  ;;  %s1107_s11 = int_to_ptr.vmem [resolvable:$false] %s1106_s11 }
  0x33   : > { %p1104_p1 = pnand %p1102_p12, %p1062_p3  ;;  %s1108_s24 = scalar_lea.vmem %s1107_s11, 512 }
  0x34   : > { %p1109_p5 = scmp.lt.s32.totalorder %s225_s5, %s1107_s11  ;;  %p1110_p6 = scmp.lt.s32.totalorder %s1108_s24, %s1101_s12 }
  0x35   : > { %p1105_p2 = pneg %p1104_p1 }
  0x36   : > { %p1111_p7 = por %p1110_p6, %p1109_p5 }
  0x38   : > { %p1112_p10 = pnand %p1111_p7, %p1105_p2 }
  0x3a   : > { %1115 = shalt.err (!%p1112_p10)
}
  0x3b   : > { %s1598_s1 = smov 128   ;;  %s261_s23 = scalar_lea.vmem [#allocation7], %s1367_s6 }
  0x3c   : > { %982 = dma.hbm_to_vmem [thread:$0]  (!%p1374_p0), %s223_s26, 256, %s225_s5, %s211_s30, %s1598_s1, %s1598_s1, %s1262_s9  }
  0x3d   : > { %s270_s29 = sshll.u32 %s261_s23, 4  ;;  %s1264_s11 = smov [#allocation7]   ;;  %s271_s29 = int_to_ptr.vmem [resolvable:$true] %s270_s29 }
  0x3e   : > { %s1129_s25 = scalar_lea.vmem %s271_s29, 256  ;;  %s1134_s10 = sshll.u32 %s1264_s11, 4  ;;  %s1135_s10 = int_to_ptr.vmem [resolvable:$false] %s1134_s10 }
  0x3f   : > { %p1130_p13 = scmp.ne.s32.totalorder %s271_s29, %s1129_s25  ;;  %s1136_s12 = scalar_lea.vmem %s1135_s10, 512 }
  0x40   : > { %p1137_p2 = scmp.lt.s32.totalorder %s271_s29, %s1135_s10  ;;  %p1138_p5 = scmp.lt.s32.totalorder %s1136_s12, %s1129_s25 }
  0x41   : > { %p1132_p12 = pnand %p1130_p13, %p1062_p3 }
  0x42   : > { %p1139_p6 = por %p1138_p5, %p1137_p2 }
  0x43   : > { %p1133_p1 = pneg %p1132_p12 }
  0x45   : > { %p1140_p7 = pnand %p1139_p6, %p1133_p1 }
  0x47   : > { %1143 = shalt.err (!%p1140_p7)
}
  0x48   : > { %988 = dma.hbm_to_vmem [thread:$0]  (!%p1374_p0), %s269_s19, 256, %s271_s29, %s1386_s22, %s1598_s1, %s1598_s1, %s1262_s9  }
  0x49   : > { %282 = sbr.rel (%p1403_p4) target bundleno = 804 (0x324), region = 32  ;;  %s1444_s6 = sand.u32 (!%p1403_p4), 1, %s1242_s16  }
  0x4a   : > { %s1447_s8 = sshll.u32 (!%p1403_p4), %s1444_s6, 4  ;;  %s285_s26 = scalar_lea.sflag (!%p1403_p4), [#allocation3], %s1444_s6 }
  0x4b   : > { %s288_s14 = scalar_lea.vmem (!%p1403_p4), [#allocation2], %s1447_s8 }
  0x4e   : > { %1221 = dma.done.wait (%p1347_p8), %s285_s26, 256  }
  0x4f   : > { %1223 = vsyncadd (%p1347_p8), %s285_s26, 4294967040  ;;  %s293_s19 = sand.u32 1, %s1327_s21   ;;  %s297_s22 = scalar_lea.vmem [#allocation5], %s1447_s8 }
  0x50   : > { %s294_s7 = scalar_lea.sflag [#allocation6], %s293_s19 }
  0x51   : > { %1225 = dma.done.wait (%p1347_p8), %s294_s7, 512  }
  0x52   : > { %1227 = vsyncadd (%p1347_p8), %s294_s7, 4294966784  ;;  %v1265_v0 = vmov 0.0   ;;  %vm1266_vm0 = vmmov 0   ;;  %vm359_vm1 = vcmask 261120   ;;  %v355_v1 = vld [vmem:[%s297_s22] sm:$0xff]  ;;  %v356_v2 = vld [vmem:[%s297_s22 + $0x8] sm:$0xff] }
  0x53   : > { %949 = vmatprep.subr.mxu0 %v1265_v0  ;;  %954 = vmatprep.subr.mxu1 %v1265_v0  ;;  %v351_v3 = vld [vmem:[%s288_s14] sm:$0xff]  ;;  %v352_v5 = vld [vmem:[%s288_s14 + $0x8] sm:$0xff]  ;;  %vm512_vm2 = vcmask 64512   ;;  %s306_s21 = scalar_lea.vmem [#allocation7], %s1447_s8  ;;  %s345_s27 = scalar_lea.vmem [#allocation9], %s1447_s8 }
  0x54   : > { %951 = vmatprep.mubr.msk.f32.mxu0 %vm1266_vm0, %v1265_v0  ;;  %956 = vmatprep.mubr.msk.f32.mxu1 %vm1266_vm0, %v1265_v0  ;;  %v353_v4 = vmul.f32 0.17677669, %v351_v3  ;;  %v354_v6 = vmul.f32 0.17677669, %v352_v5  ;;  %v357_v23 = vld [vmem:[%s306_s21] sm:$0xff]  ;;  %v358_v24 = vld [vmem:[%s306_s21 + $0x8] sm:$0xff] }
  0x55   : > { %950 = vmatpush3.xpose.msk.msra.mxu0 %vm359_vm1, %v355_v1  ;;  %955 = vmatpush3.xpose.msk.msra.mxu1 %vm359_vm1, %v356_v2  ;;  %s939_s9 = sshll.u32 %s1250_s18, 8  ;;  %s726_s13 = sshll.u32 %s345_s27, 4  ;;  %s1487_s13 = int_to_ptr.vmem [resolvable:$true] %s726_s13 }
  0x56   : > { %959 = vmatprep.subr.mxu0 %v1265_v0  ;;  %964 = vmatprep.subr.mxu1 %v1265_v0  ;;  %s1485_s23 = scalar_lea.hbm %s1578_s4, %s939_s9  ;;  %s691_s29 = scalar_lea.sflag [#allocation10], %s1444_s6 }
  0x57   : > { %s1144_s25 = scalar_lea.vmem %s1487_s13, 256  ;;  %s1267_s11 = smov [#allocation9]  }
  0x58   : > { %952 = vmatmul.mubr.msk.f32.vlgmr.msra.gmra.mxu0 %vm359_vm1, %v353_v4  ;;  %957 = vmatmul.mubr.msk.f32.vlgmr.msra.gmra.mxu1 %vm359_vm1, %v354_v6  ;;  %p1145_p8 = scmp.ne.s32.totalorder %s1487_s13, %s1144_s25  ;;  %s1148_s10 = sshll.u32 %s1267_s11, 4  ;;  %s1149_s10 = int_to_ptr.vmem [resolvable:$false] %s1148_s10 }
  0x59   : > { %961 = vmatprep.mubr.msk.f32.mxu0 %vm1266_vm0, %v1265_v0  ;;  %966 = vmatprep.mubr.msk.f32.mxu1 %vm1266_vm0, %v1265_v0  ;;  %s1150_s12 = scalar_lea.vmem %s1149_s10, 512  ;;  %p1151_p4 = scmp.lt.s32.totalorder %s1487_s13, %s1149_s10 }
  0x5a   : > { %960 = vmatpush3.msra.mxu0 %v357_v23  ;;  %965 = vmatpush3.msra.mxu1 %v358_v24  ;;  %p1146_p0 = pnand %p1145_p8, %p1351_p9  ;;  %p1152_p10 = scmp.lt.s32.totalorder %s1150_s12, %s1144_s25 }
  0x5c   : > { %p1147_p3 = pneg %p1146_p0  ;;  %p1153_p13 = por %p1152_p10, %p1151_p4 }
  0x5e   : > { %p1154_p12 = pnand %p1153_p13, %p1147_p3 }
 0x118   : > { %v432_v7 = vpop.f32.mrf.mxu0  ;;  %v508_v8 = vpop.f32.mrf.mxu1 }
 0x119   : > { %v513_v9 = vsel %vm512_vm2, %v432_v7, -inf  ;;  %v516_v12 = vsel %vm512_vm2, %v508_v8, -inf }
 0x11a   : > { %514 = vmax.xlane.f32.xlu0 %v513_v9  ;;  %v953_v10 = vpop.f32.mrf.mxu0  ;;  %v958_v11 = vpop.f32.mrf.mxu1 }
 0x11e   : > { %517 = vmax.xlane.f32.xlu0 %v516_v12 }
 0x1a3   : > { %v515_v13 = vpop.xlane.xlu0 %514 }
 0x1a4   : > { %v519_v14 = vsub.f32 %v432_v7, %v515_v13 }
 0x1a6   : > { %v521_v15 = vmul.f32 1.442695, %v519_v14 }
 0x1a7   : > { %v518_v16 = vpop.xlane.xlu0 %517 }
 0x1a8   : > { %1052 = vpow2.f32 %v521_v15  ;;  %v520_v17 = vsub.f32 %v508_v8, %v518_v16 }
 0x1aa   : > { %v523_v18 = vmul.f32 1.442695, %v520_v17 }
 0x1ac   : > { %1054 = vpow2.f32 %v523_v18 }
 0x1b5   : > { %v1053_v19 = vpop.eup %1052 }
 0x1b6   : > { %v525_v20 = vsel %vm512_vm2, %v1053_v19, 0.0 }
 0x1b7   : > { %526 = vadd.xlane.f32.xlu1 %v525_v20 }
 0x1b9   : > { %v1055_v21 = vpop.eup %1054 }
 0x1ba   : > { %v528_v22 = vsel %vm512_vm2, %v1055_v21, 0.0 }
 0x1bb   : > { %529 = vadd.xlane.f32.xlu1 %v528_v22 }
 0x240   : > { %v527_v25 = vpop.xlane.xlu1 %526 }
 0x241   : > { %1056 = vrcp.f32 %v527_v25 }
 0x244   : > { %v530_v26 = vpop.xlane.xlu1 %529 }
 0x245   : > { %1058 = vrcp.f32 %v530_v26 }
 0x24e   : > { %v1057_v27 = vpop.eup %1056 }
 0x24f   : > { %v532_v28 = vmul.f32 %v1057_v27, %v1053_v19 }
 0x251   : > { %962 = vmatmul.mubr.msk.f32.vlgmr.msra.gmra.mxu0 %vm512_vm2, %v532_v28  ;;  %683 = vst.msk [vmem:[%s345_s27] sm:$0xff] %vm512_vm2, %v532_v28 }
 0x252   : > { %v1059_v29 = vpop.eup %1058 }
 0x253   : > { %v534_v30 = vmul.f32 %v1059_v29, %v1055_v21 }
 0x255   : > { %967 = vmatmul.mubr.msk.f32.vlgmr.msra.gmra.mxu1 %vm512_vm2, %v534_v30  ;;  %684 = vst.msk [vmem:[%s345_s27 + $0x8] sm:$0xff] %vm512_vm2, %v534_v30 }
 0x256   : > { %1157 = shalt.err (!%p1154_p12)
}
 0x257   : > { %s1158_s30 = scalar_lea.hbm %s1485_s23, 256  ;;  %s1162_s14 = scalar_lea.hbm %s1578_s4, 512 }
 0x258   : > { %p1159_p1 = scmp.ne.s32.totalorder %s1485_s23, %s1158_s30  ;;  %p1163_p6 = scmp.lt.s32.totalorder %s1485_s23, %s1578_s4 }
 0x259   : > { %p1164_p7 = scmp.lt.s32.totalorder %s1162_s14, %s1158_s30 }
 0x25a   : > { %p1160_p2 = pnand %p1159_p1, %p1351_p9 }
 0x25b   : > { %p1165_p8 = por %p1164_p7, %p1163_p6 }
 0x25c   : > { %p1161_p5 = pneg %p1160_p2 }
 0x25e   : > { %p1166_p0 = pnand %p1165_p8, %p1161_p5 }
 0x260   : > { %1169 = shalt.err (!%p1166_p0)
}
 0x261   : > { %s1268_s22 = smov 128   ;;  %s1269_s21 = smov 8  }
 0x262   : > { %976 = dma.vmem_to_hbm [thread:$0]  (%p1351_p9), %s1487_s13, 256, %s1485_s23, %s691_s29, %s1268_s22, %s1268_s22, %s1269_s21  }
 0x263   : > { %s338_s27 = scalar_lea.vmem [#allocation8], %s1447_s8  ;;  %s1524_s11 = scalar_lea.hbm %s1577_s3, %s939_s9 }
 0x264   : > { %s707_s24 = sshll.u32 %s338_s27, 4  ;;  %s686_s8 = scalar_lea.sflag [#allocation4], %s1444_s6  ;;  %s1517_s24 = int_to_ptr.vmem [resolvable:$true] %s707_s24 }
 0x265   : > { %s1170_s13 = scalar_lea.vmem %s1517_s24, 256  ;;  %s1270_s23 = smov [#allocation8]  }
 0x266   : > { %p1171_p3 = scmp.ne.s32.totalorder %s1517_s24, %s1170_s13  ;;  %s1174_s29 = sshll.u32 %s1270_s23, 4  ;;  %s1175_s29 = int_to_ptr.vmem [resolvable:$false] %s1174_s29 }
 0x267   : > { %s1176_s10 = scalar_lea.vmem %s1175_s29, 512  ;;  %p1177_p13 = scmp.lt.s32.totalorder %s1517_s24, %s1175_s29 }
 0x268   : > { %p1172_p4 = pnand %p1171_p3, %p1351_p9  ;;  %p1178_p12 = scmp.lt.s32.totalorder %s1176_s10, %s1170_s13 }
 0x26a   : > { %p1173_p10 = pneg %p1172_p4  ;;  %p1179_p1 = por %p1178_p12, %p1177_p13 }
 0x26c   : > { %p1180_p2 = pnand %p1179_p1, %p1173_p10 }
 0x311   : > { %v604_v31 = vpop.f32.mrf.mxu0 }
 0x312   : > { %681 = vst.msk [vmem:[%s338_s27] sm:$0xff] %vm359_vm1, %v604_v31 }
 0x313   : > { %v963_v32 = vpop.f32.mrf.mxu0 }
 0x315   : > { %v677_v33 = vpop.f32.mrf.mxu1 }
 0x316   : > { %682 = vst.msk [vmem:[%s338_s27 + $0x8] sm:$0xff] %vm359_vm1, %v677_v33 }
 0x317   : > { %v968_v34 = vpop.f32.mrf.mxu1 }
 0x318   : > { %1183 = shalt.err (!%p1180_p2)
}
 0x319   : > { %s1184_s18 = scalar_lea.hbm %s1524_s11, 256  ;;  %s1188_s12 = scalar_lea.hbm %s1577_s3, 512 }
 0x31a   : > { %p1185_p5 = scmp.ne.s32.totalorder %s1524_s11, %s1184_s18  ;;  %p1189_p8 = scmp.lt.s32.totalorder %s1524_s11, %s1577_s3 }
 0x31b   : > { %p1190_p0 = scmp.lt.s32.totalorder %s1188_s12, %s1184_s18 }
 0x31c   : > { %p1186_p6 = pnand %p1185_p5, %p1351_p9 }
 0x31d   : > { %p1191_p3 = por %p1190_p0, %p1189_p8 }
 0x31e   : > { %p1187_p7 = pneg %p1186_p6 }
 0x320   : > { %p1192_p4 = pnand %p1191_p3, %p1187_p7 }
 0x322   : > { %1195 = shalt.err (!%p1192_p4)
}
 0x323   : > { %975 = dma.vmem_to_hbm [thread:$0]  (%p1351_p9), %s1517_s24, 256, %s1524_s11, %s686_s8, %s1268_s22, %s1268_s22, %s1269_s21  }
 0x324 PF: > { %s741_s14 = sand.u32 1, %s1238_s15   ;;  %p1600_p10 = scmp.ge.s32.totalorder %s1258_s20, 2 }
 0x325   : > { %s742_s19 = scalar_lea.sflag [#allocation4], %s741_s14 }
 0x326   : > { %p990_p13 = pnand %p1600_p10, %p1358_p11 }
 0x328   : > { %p991_p12 = pneg %p990_p13 }
 0x32a   : > { %1229 = dma.done.wait (%p991_p12), %s742_s19, 256  }
 0x32b   : > { %1231 = vsyncadd (%p991_p12), %s742_s19, 4294967040  ;;  %s751_s7 = scalar_lea.sflag [#allocation10], %s741_s14 }
 0x32c   : > { %1233 = dma.done.wait (%p991_p12), %s751_s7, 256  }
 0x32d   : > { %1235 = vsyncadd (%p991_p12), %s751_s7, 4294967040  ;;  %s27_s20 = sadd.s32 1, %s1258_s20   ;;  %s1601_s28 = sld [smem:[#allocation17_spill]] }
 0x32e   : > { %p24_p1 = scmp.ge.s32.totalorder %s27_s20, 4   ;;  %s1602_s18 = sld [smem:[#allocation15_spill]] }
 0x32f   : > { %s1603_s19 = sld [smem:[#allocation16_spill]]  ;;  %s1604_s15 = smov %s1242_s16 }
 0x330   : > { %s1605_s16 = smov %s1246_s17  ;;  %26 = sbr.rel (!%p24_p1) target bundleno = 12 (0xc), region = 118 }
 0x333   : > { %s1606_s17 = smov %s1601_s28 }
 0x335   :  { %756 = vsyncpa [#allocation3], 1 }
 0x336   :  { %758 = vsyncpa [#allocation3 + $0x1], 1 }
 0x337   :  { %759 = vsyncpa [#allocation6], 1 }
 0x338   :  { %761 = vsyncpa [#allocation6 + $0x1], 1 }
 0x339   :  { %762 = vsyncpa [#allocation4], 1 }
 0x33a   :  { %764 = vsyncpa [#allocation4 + $0x1], 1 }
 0x33b   :  { %765 = vsyncpa [#allocation10], 1 }
 0x33c   :  { %767 = vsyncpa [#allocation10 + $0x1], 1 }

</bundles_post_ra>
